<compile_context>
chip_gen: v6e
topology: v6e:2x2x1
jax: 0.10.0
libtpu: 0.0.40
codegen_flags: <defaults>
</compile_context>

<pallas_src>
import numpy as np
import jax
import jax.numpy as jnp
from jax.experimental import pallas as pl
from jax.experimental.pallas import tpu as pltpu


# ----------------------------------------------------------------------------
# The concrete MATLAB graph this module instance traces (documentation /
# reference only).  Node types mirror syntax_tree.eval_m; uuid_list order
# matches the forward(*args) argument order: (x, W, b, scale).
# ----------------------------------------------------------------------------
def build_graph():
    U_X, U_W, U_B, U_S = "u_x", "u_w", "u_b", "u_s"
    leaf = lambda u: {"Uuid": u, "Type": "leaf", "Data": None, "Nodes": []}
    mm   = {"Uuid": "u_mm",   "Type": "opr",  "Data": "mtimes",
            "Nodes": [leaf(U_X), leaf(U_W)]}
    add  = {"Uuid": "u_add",  "Type": "opr",  "Data": "plus",
            "Nodes": [mm, leaf(U_B)]}
    tanh = {"Uuid": "u_tanh", "Type": "func", "Data": "tanh", "Nodes": [add]}
    out  = {"Uuid": "u_out",  "Type": "opr",  "Data": "times",
            "Nodes": [tanh, leaf(U_S)]}
    uuid_list = [U_X, U_W, U_B, U_S]
    return out, uuid_list


# ----------------------------------------------------------------------------
# Pallas kernel: one batch tile of the graph forward.
#   x_ref     : (TB, H)  bf16   (streamed per grid step)
#   w_ref     : (H,  F)  bf16   (resident across the grid)
#   b_ref     : (1,  F)  f32    (resident)
#   scale_ref : (1,  1)  f32    (SMEM scalar, resident)
#   o_ref     : (TB, F)  f32    (streamed per grid step; lane-dense)
# ----------------------------------------------------------------------------
def _matlab_graph_kernel(x_ref, w_ref, b_ref, scale_ref, o_ref):
    # Hoist the SMEM scalar off the vector critical path.
    s = scale_ref[0, 0]
    # 'mtimes' -> MXU, bf16 operands, f32 accumulate.
    acc = jnp.dot(x_ref[...], w_ref[...], preferred_element_type=jnp.float32)
    # 'plus' (bias broadcast over batch rows) -> VPU.
    acc = acc + b_ref[...]
    # func 'tanh' -> EUP.
    acc = jnp.tanh(acc)
    # 'times' by the scalar parameter -> VPU.
    acc = acc * s
    o_ref[...] = acc.astype(o_ref.dtype)


def matlab_traced_forward(x, W, b, scale, *, tb=128):
    """Forward pass of the traced graph y = tanh(x @ W + b) * scale."""
    B, H = x.shape
    H2, F = W.shape
    assert H == H2 and b.shape == (1, F) and scale.shape == (1, 1)
    assert B % tb == 0, "batch must be divisible by the batch tile"
    assert F % 128 == 0 and H % 128 == 0 and tb % 8 == 0

    # bf16 operands for the MXU; accumulation and epilogue stay f32.
    x_bf = x.astype(jnp.bfloat16)
    w_bf = W.astype(jnp.bfloat16)

    grid = (B // tb,)
    return pl.pallas_call(
        _matlab_graph_kernel,
        out_shape=jax.ShapeDtypeStruct((B, F), jnp.float32),
        grid=grid,
        in_specs=[
            pl.BlockSpec((tb, H), lambda i: (i, 0)),     # x streams over batch
            pl.BlockSpec((H, F), lambda i: (0, 0)),      # W resident in VMEM
            pl.BlockSpec((1, F), lambda i: (0, 0)),      # b resident in VMEM
            pl.BlockSpec(memory_space=pltpu.MemorySpace.SMEM),  # scalar scale
        ],
        out_specs=pl.BlockSpec((tb, F), lambda i: (i, 0)),  # lane-dense output
        compiler_params=pltpu.CompilerParams(
            dimension_semantics=("parallel",)),          # shard batch tiles on v7x
    )(x_bf, w_bf, b, scale)


# Pure-JAX reference mimicking eval_m on the fixed graph (uses the same
# bf16-rounded operands so only accumulation-order differences remain).
def reference_forward(x, W, b, scale):
    x32 = x.astype(jnp.bfloat16).astype(jnp.float32)
    w32 = W.astype(jnp.bfloat16).astype(jnp.float32)
    return jnp.tanh(x32 @ w32 + b) * scale[0, 0]


if __name__ == "__main__":
    # MXU-/lane-aligned shapes: hidden H=128, features F=128, batch B=256,
    # batch tile TB=128 (grid of 2 tiles, W/b/scale resident).
    B, H, F, TB = 256, 128, 128, 128

    key = jax.random.PRNGKey(0)
    k_x, k_w, k_b, k_s = jax.random.split(key, 4)

    # The module's traced parameters (graph constants) and its input.
    x = jax.random.normal(k_x, (B, H), dtype=jnp.float32)
    W = jax.random.normal(k_w, (H, F), dtype=jnp.float32) * 0.1
    b = jax.random.normal(k_b, (1, F), dtype=jnp.float32) * 0.1
    scale = 1.0 + 0.1 * jax.random.normal(k_s, (1, 1), dtype=jnp.float32)

    # (graph construction kept for documentation of the traced module)
    _graph, _uuid_list = build_graph()

    y = matlab_traced_forward(x, W, b, scale, tb=TB)
    y = jax.block_until_ready(y)

    y_ref = reference_forward(x, W, b, scale)
    np.testing.assert_allclose(np.asarray(y), np.asarray(y_ref),
                               rtol=2e-3, atol=2e-3)

    print("KERNEL_OK")
</pallas_src>

<mosaic_0001>
module attributes {stable_mosaic.version = 11 : i64} {
  func.func @_matlab_graph_kernel(%arg0: i32, %arg1: memref<128x128xbf16, #tpu.memory_space<vmem>>, %arg2: memref<128x128xbf16, #tpu.memory_space<vmem>>, %arg3: memref<1x128xf32, #tpu.memory_space<vmem>>, %arg4: memref<1x1xf32, #tpu.memory_space<smem>>, %arg5: memref<128x128xf32, #tpu.memory_space<vmem>>) attributes {dimension_semantics = [#tpu.dimension_semantics<parallel>], iteration_bounds = array<i64: 2>, scalar_prefetch = 0 : i64, scratch_operands = 0 : i64, tpu.core_type = #tpu.core_type<tc>, window_params = [{transform_indices = @transform_0, window_bounds = array<i64: 128, 128>}, {pipeline_mode = #tpu.pipeline_mode<synchronous>, transform_indices = @transform_1, window_bounds = array<i64: 128, 128>}, {pipeline_mode = #tpu.pipeline_mode<synchronous>, transform_indices = @transform_2, window_bounds = array<i64: 1, 128>}, {transform_indices = @transform_3, window_bounds = array<i64: 1, 1>}, {transform_indices = @transform_4, window_bounds = array<i64: 128, 128>}]} {
    %c0 = arith.constant 0 : index
    %c0_0 = arith.constant 0 : index
    %0 = memref.load %arg4[%c0, %c0_0] : memref<1x1xf32, #tpu.memory_space<smem>>
    %c0_1 = arith.constant 0 : index
    %c0_2 = arith.constant 0 : index
    %1 = vector.load %arg1[%c0_1, %c0_2] : memref<128x128xbf16, #tpu.memory_space<vmem>>, vector<128x128xbf16>
    %c0_3 = arith.constant 0 : index
    %c0_4 = arith.constant 0 : index
    %2 = vector.load %arg2[%c0_3, %c0_4] : memref<128x128xbf16, #tpu.memory_space<vmem>>, vector<128x128xbf16>
    %cst = arith.constant dense<0.000000e+00> : vector<128x128xf32>
    %3 = tpu.matmul %1, %2, %cst {dimension_numbers = #tpu.dot_dimension_numbers<[1], [0], [0], [1], [0, 0, 1, 1], [], []>} : vector<128x128xbf16>, vector<128x128xbf16>, vector<128x128xf32> -> vector<128x128xf32>
    %c0_5 = arith.constant 0 : index
    %c0_6 = arith.constant 0 : index
    %4 = vector.load %arg3[%c0_5, %c0_6] : memref<1x128xf32, #tpu.memory_space<vmem>>, vector<1x128xf32>
    %5 = vector.broadcast %4 : vector<1x128xf32> to vector<128x128xf32>
    %6 = arith.addf %3, %5 : vector<128x128xf32>
    %7 = math.tanh %6 : vector<128x128xf32>
    %8 = vector.broadcast %0 : f32 to vector<128x128xf32>
    %9 = arith.mulf %7, %8 : vector<128x128xf32>
    %c0_7 = arith.constant 0 : index
    %c0_8 = arith.constant 0 : index
    %10 = vector.load %arg5[%c0_7, %c0_8] : memref<128x128xf32, #tpu.memory_space<vmem>>, vector<128x128xf32>
    tpu.vector_store %arg5[%c0_7, %c0_8], %9 {strides = array<i32>} : memref<128x128xf32, #tpu.memory_space<vmem>>, vector<128x128xf32>,
    return
  }
  func.func @transform_0(%arg0: i32) -> (i32, i32) {
    %c0_i32 = arith.constant 0 : i32
    %c0_i32_0 = arith.constant 0 : i32
    return %arg0, %c0_i32 : i32, i32
  }
  func.func @transform_1(%arg0: i32) -> (i32, i32) {
    %c0_i32 = arith.constant 0 : i32
    %c0_i32_0 = arith.constant 0 : i32
    %c0_i32_1 = arith.constant 0 : i32
    return %c0_i32, %c0_i32_0 : i32, i32
  }
  func.func @transform_2(%arg0: i32) -> (i32, i32) {
    %c0_i32 = arith.constant 0 : i32
    %c0_i32_0 = arith.constant 0 : i32
    %c0_i32_1 = arith.constant 0 : i32
    return %c0_i32, %c0_i32_0 : i32, i32
  }
  func.func @transform_3(%arg0: i32) -> (i32, i32) {
    %c0_i32 = arith.constant 0 : i32
    %c0_i32_0 = arith.constant 0 : i32
    %c0_i32_1 = arith.constant 0 : i32
    return %c0_i32, %c0_i32_0 : i32, i32
  }
  func.func @transform_4(%arg0: i32) -> (i32, i32) {
    %c0_i32 = arith.constant 0 : i32
    %c0_i32_0 = arith.constant 0 : i32
    return %arg0, %c0_i32 : i32, i32
  }
}

</mosaic_0001>

<bundles_post_ra>
// kernel: tpu_custom_call.1
= control target key start
LH: loop header
LB: loop body
LE: loop exit
PB: predicated region body
PF: predicated region fallthrough
CT: control target
= control target key end

     0   :  { %s1197_s0 = inlined_call_operand.hbm [shape: bf16[256,128], index: 0, kind: input, shape index: {}]   ;;  %s1198_s1 = inlined_call_operand.hbm [shape: bf16[128,128], index: 1, kind: input, shape index: {}]   ;;  %s1199_s2 = inlined_call_operand.vmem [shape: f32[1,128], index: 2, kind: input, shape index: {}]   ;;  %s1200_s3 = inlined_call_operand.<no memory space> [shape: f32[1,1], index: 3, kind: input, shape index: {}]   ;;  %s1201_s4 = inlined_call_operand.hbm [shape: f32[256,128], index: 4, kind: output, shape index: {}]  }
   0x1   :  { %9 = sst [smem:[#allocation2]] %s1200_s3 }
   0x2   :  { %10 = vsyncpa [#allocation4], 0 }
   0x3   :  { %12 = vsyncpa [#allocation4 + $0x1], 0 }
   0x4   :  { %13 = vsyncpa [#allocation7], 0 }
   0x5   :  { %14 = vsyncpa [#allocation5], 0 }
   0x6   :  { %16 = vsyncpa [#allocation5 + $0x1], 0  ;;  %s981_s17 = smov 0   ;;  %s983_s18 = smov 0  }
   0x7   :  { %s985_s19 = smov 0   ;;  %s987_s20 = smov 0  }
   0x8 LB: > { %s1002_s3 = sadd.s32 4294967295, %s944_s20   ;;  %s614_s21 = sadd.s32 4294967294, %s944_s20   ;;  %s944_s20 = sphi %s987_s20, %s1223_s20   ;;  %s940_s19 = sphi %s985_s19, %s1222_s19   ;;  %s936_s18 = sphi %s983_s18, %s1221_s18   ;;  %s932_s17 = sphi %s981_s17, %s1220_s17  }
   0x9   : > { %p42_p0 = scmp.ne.s32.totalorder %s936_s18, %s932_s17  ;;  %p1202_p1 = scmp.eq.s32.totalorder %s1002_s3, 0 }
   0xa   : > { %p135_p3 = scmp.eq.s32.totalorder %s614_s21, 1  ;;  %p615_p5 = scmp.ge.s32.totalorder %s944_s20, 1 }
   0xb   : > { %p1011_p4 = por %p1202_p1, %p42_p0  ;;  %p142_p7 = scmp.lt.s32.totalorder %s944_s20, 3 }
   0xc   : > { %p1016_p6 = por %p135_p3, %p42_p0  ;;  %s946_s25 = smov [#allocation6]  }
   0xd   : > { %s1206_s22 = scalar_select %p1011_p4, 1, 0 }
   0xe   : > { %s1207_s23 = scalar_select %p1016_p6, 1, 0 }
   0xf   : > { %p1021_p8 = pnand %p615_p5, %p142_p7  ;;  %s154_s26 = sshll.u32 %s946_s25, 4  ;;  %s155_s26 = int_to_ptr.vmem [resolvable:$true] %s154_s26 }
  0x10   : > { %s1035_s28 = sadd.s32 1, %s944_s20   ;;  %s29_s29 = sadd.s32 1, %s940_s19 }
  0x11   : > { %s1208_s24 = scalar_select %p1021_p8, 1, 0 }
  0x12   : > { %p721_p9 = pneg %p1021_p8  ;;  %s26_s30 = ssub.s32 %s944_s20, %s1035_s28 }
  0x13   : > { %s833_s5 = scalar_lea.vmem %s155_s26, 1024  ;;  %p841_p5 = scmp.lt.s32.totalorder %s155_s26, %s155_s26 }
  0x14   : > { %p1030_p11 = pnand %p721_p9, %p1202_p1  ;;  %p834_p13 = scmp.ne.s32.totalorder %s155_s26, %s833_s5 }
  0x15   : > { %p842_p7 = scmp.lt.s32.totalorder %s833_s5, %s833_s5 }
  0x16   : > { %p824_p12 = pneg %p1030_p11 }
  0x17   : > { %p843_p10 = por %p842_p7, %p841_p5 }
  0x18   : > { %p836_p0 = pnand %p834_p13, %p824_p12 }
  0x1a   : > { %p837_p3 = pneg %p836_p0 }
  0x1c   : > { %p844_p2 = pnand %p843_p10, %p837_p3 }
  0x1e   : > { %847 = shalt.err (!%p844_p2)
}
  0x1f   : > { %s947_s6 = smov 64   ;;  %s948_s7 = smov 4  }
  0x20   : > { %724 = dma.hbm_to_vmem [thread:$0]  (!%p1030_p11), %s1198_s1, 1024, %s155_s26, [#allocation7], %s947_s6, %s947_s6, %s948_s7  }
  0x21   : > { %p27_p2 = scmp.eq.s32.totalorder %s26_s30, 0  ;;  %p36_p9 = scmp.ne.s32.totalorder %s940_s19, %s936_s18 }
  0x22   : > { %p37_p10 = scmp.eq.s32.totalorder %s944_s20, 0  ;;  %p734_p12 = scmp.lt.s32.totalorder %s944_s20, 2 }
  0x23   : > { %s1055_s10 = scalar_select %p27_p2, %s940_s19, %s29_s29  }
  0x24   : > { %p38_p13 = por %p37_p10, %p36_p9  ;;  %p1210_p0 = scmp.eq.s32.totalorder %s1002_s3, 1 }
  0x25   : > { %s174_s12 = sand.u32 1, %s940_s19   ;;  %s647_s13 = sshll.u32 %s944_s20, 10 }
  0x26   : > { %p1059_p3 = por %p1210_p0, %p36_p9  ;;  %s618_s14 = sshll.u32 %s174_s12, 6 }
  0x27   : > { %s1068_s21 = scalar_lea.hbm %s1197_s0, %s647_s13  ;;  %s178_s25 = scalar_lea.vmem [#allocation3], %s618_s14 }
  0x28   : > { %s1211_s11 = scalar_select %p1059_p3, 1, 0 }
  0x29   : > { %s185_s26 = sshll.u32 %s178_s25, 4  ;;  %p1070_p11 = pnand %p734_p12, %p38_p13  ;;  %s1074_s26 = int_to_ptr.vmem [resolvable:$true] %s185_s26 }
  0x2a   : > { %s1076_s29 = scalar_lea.sflag [#allocation4], %s174_s12  ;;  %s848_s30 = scalar_lea.hbm %s1068_s21, 1024 }
  0x2b   : > { %p849_p5 = scmp.ne.s32.totalorder %s1068_s21, %s848_s30  ;;  %p850_p7 = pneg %p1070_p11 }
  0x2c   : > { %s853_s9 = scalar_lea.hbm %s1197_s0, 2048  ;;  %p854_p10 = scmp.lt.s32.totalorder %s1068_s21, %s1197_s0 }
  0x2d   : > { %p851_p2 = pnand %p850_p7, %p849_p5  ;;  %p855_p12 = scmp.lt.s32.totalorder %s853_s9, %s848_s30 }
  0x2f   : > { %p852_p9 = pneg %p851_p2  ;;  %p856_p13 = por %p855_p12, %p854_p10 }
  0x31   : > { %p857_p0 = pnand %p856_p13, %p852_p9 }
  0x33   : > { %860 = shalt.err (!%p857_p0)
}
  0x34   : > { %s861_s12 = scalar_lea.vmem %s1074_s26, 1024  ;;  %s949_s15 = smov [#allocation3]  }
  0x35   : > { %p862_p1 = scmp.ne.s32.totalorder %s1074_s26, %s861_s12  ;;  %s866_s16 = sshll.u32 %s949_s15, 4  ;;  %s867_s16 = int_to_ptr.vmem [resolvable:$false] %s866_s16 }
  0x36   : > { %s868_s25 = scalar_lea.vmem %s867_s16, 2048  ;;  %p869_p2 = scmp.lt.s32.totalorder %s1074_s26, %s867_s16 }
  0x37   : > { %p864_p6 = pnand %p862_p1, %p850_p7  ;;  %p870_p3 = scmp.lt.s32.totalorder %s868_s25, %s861_s12 }
  0x39   : > { %p865_p5 = pneg %p864_p6  ;;  %p871_p4 = por %p870_p3, %p869_p2 }
  0x3b   : > { %p872_p8 = pnand %p871_p4, %p865_p5 }
  0x3d   : > { %875 = shalt.err (!%p872_p8)
}
  0x3e   : > { %728 = dma.hbm_to_vmem [thread:$0]  (!%p1070_p11), %s1068_s21, 1024, %s1074_s26, %s1076_s29, %s947_s6, %s947_s6, %s948_s7  }
  0x3f   : > { %p1213_p1 = scmp.ne.s32.totalorder %s1208_s24, 0 }
  0x40   : > { %s1103_s30 = sand.u32 (!%p1213_p1), 1, %s936_s18   ;;  %p1214_p4 = scmp.ne.s32.totalorder (!%p1213_p1), %s1206_s22, 0 }
  0x41   : > { %197 = sbr.rel (%p1213_p1) target bundleno = 347 (0x15b), region = 36  ;;  %s622_s5 = sshll.u32 (!%p1213_p1), %s1103_s30, 6 }
  0x42   : > { %s200_s8 = scalar_lea.sflag (!%p1213_p1), [#allocation4], %s1103_s30  ;;  %s1107_s9 = scalar_lea.vmem (!%p1213_p1), [#allocation3], %s622_s5 }
  0x46   : > { %919 = dma.done.wait (%p1214_p4), %s200_s8, 1024  }
  0x47   : > { %921 = vsyncadd (%p1214_p4), %s200_s8, 4294966272  ;;  %p1215_p6 = scmp.eq.s32.totalorder %s1002_s3, 0 }
  0x49   : > { %923 = dma.done.wait (%p1215_p6), [#allocation7], 1024   ;;  %p1216_p8 = pmov %p1215_p6 }
  0x4a   : > { %v774_v0 = vld [vmem:[#allocation6 + $0x38] sm:$0xff]   ;;  %v775_v1 = vld [vmem:[#allocation6 + $0x30] sm:$0xff]   ;;  %v776_v2 = vld [vmem:[#allocation6 + $0x28] sm:$0xff]   ;;  %s235_s6 = sld [smem:[#allocation2]]  ;;  %s624_s7 = sshll.u32 %s1103_s30, 7 }
  0x4b   : > { %925 = vsyncadd (%p1216_p8), [#allocation7], 4294966272  ;;  %665 = vmatprep.subr.bf16.mxu0 %v774_v0  ;;  %697 = vmatprep.subr.bf16.mxu1 %v774_v0  ;;  %v777_v3 = vld [vmem:[#allocation6 + $0x20] sm:$0xff]   ;;  %v778_v6 = vld [vmem:[#allocation6 + $0x18] sm:$0xff]   ;;  %s1129_s21 = scalar_lea.vmem [#allocation8], %s624_s7  ;;  %s648_s26 = sshll.u32 %s1002_s3, 11 }
  0x4c   : > { %666 = vmatpush3.bf16.msra.mxu0 %v774_v0  ;;  %705 = vmatpush3.bf16.msra.mxu1 %v774_v0  ;;  %v782_v4 = vld [vmem:[%s1107_s9] sm:$0xff]   ;;  %v779_v7 = vld [vmem:[#allocation6 + $0x10] sm:$0xff]   ;;  %v780_v8 = vld [vmem:[#allocation6 + $0x8] sm:$0xff]   ;;  %s531_s27 = sshll.u32 %s1129_s21, 4  ;;  %s1149_s14 = scalar_lea.hbm %s1201_s4, %s648_s26  ;;  %s1151_s27 = int_to_ptr.vmem [resolvable:$true] %s531_s27 }
  0x4d   : > { %667 = vmatprep.subr.bf16.mxu0 %v775_v1  ;;  %698 = vmatprep.subr.bf16.mxu1 %v775_v1  ;;  %v783_v5 = vld [vmem:[%s1107_s9 + $0x20] sm:$0xff]   ;;  %v784_v10 = vld [vmem:[%s1107_s9 + $0x8] sm:$0xff]   ;;  %v786_v12 = vld [vmem:[%s1107_s9 + $0x10] sm:$0xff]   ;;  %s518_s3 = scalar_lea.sflag [#allocation5], %s1103_s30  ;;  %s876_s12 = scalar_lea.vmem %s1151_s27, 2048 }
  0x4e   : > { %681 = vmatprep.mubr.bf16.mxu0 %v782_v4  ;;  %689 = vmatprep.mubr.bf16.mxu1 %v783_v5  ;;  %v781_v9 = vld [vmem:[#allocation6] sm:$0xff]   ;;  %v785_v11 = vld [vmem:[%s1107_s9 + $0x28] sm:$0xff]   ;;  %v787_v13 = vld [vmem:[%s1107_s9 + $0x30] sm:$0xff]   ;;  %p877_p3 = scmp.ne.s32.totalorder %s1151_s27, %s876_s12  ;;  %p1217_p11 = scmp.ne.s32.totalorder %s1211_s11, 0 }
  0x4f   : > { %v788_v14 = vld [vmem:[%s1107_s9 + $0x18] sm:$0xff]   ;;  %v625_v16 = vld [vmem:[%s1199_s2] ss:$0 sm:$0xff]  ;;  %s950_s15 = smov [#allocation8]  }
  0x50   : > { %668 = vmatpush3.bf16.msra.mxu0 %v775_v1  ;;  %706 = vmatpush3.bf16.msra.mxu1 %v775_v1  ;;  %v789_v15 = vld [vmem:[%s1107_s9 + $0x38] sm:$0xff]   ;;  %v484_v45 = vstv %s235_s6  ;;  %p878_p7 = pnand %p877_p3, %p1217_p11  ;;  %s880_s16 = sshll.u32 %s950_s15, 4  ;;  %s881_s16 = int_to_ptr.vmem [resolvable:$false] %s880_s16 }
  0x51   : > { %669 = vmatprep.subr.bf16.mxu0 %v776_v2  ;;  %699 = vmatprep.subr.bf16.mxu1 %v776_v2  ;;  %s882_s25 = scalar_lea.vmem %s881_s16, 4096  ;;  %p883_p10 = scmp.lt.s32.totalorder %s1151_s27, %s881_s16 }
  0x52   : > { %p879_p9 = pneg %p878_p7  ;;  %p884_p12 = scmp.lt.s32.totalorder %s882_s25, %s876_s12 }
  0x54   : > { %670 = vmatpush3.bf16.msra.mxu0 %v776_v2  ;;  %707 = vmatpush3.bf16.msra.mxu1 %v776_v2  ;;  %p885_p13 = por %p884_p12, %p883_p10 }
  0x55   : > { %671 = vmatprep.subr.bf16.mxu0 %v777_v3  ;;  %700 = vmatprep.subr.bf16.mxu1 %v777_v3 }
  0x56   : > { %p886_p0 = pnand %p885_p13, %p879_p9 }
  0x58   : > { %672 = vmatpush3.bf16.msra.mxu0 %v777_v3  ;;  %708 = vmatpush3.bf16.msra.mxu1 %v777_v3 }
  0x59   : > { %673 = vmatprep.subr.bf16.mxu0 %v778_v6  ;;  %701 = vmatprep.subr.bf16.mxu1 %v778_v6 }
  0x5c   : > { %674 = vmatpush3.bf16.msra.mxu0 %v778_v6  ;;  %709 = vmatpush3.bf16.msra.mxu1 %v778_v6 }
  0x5d   : > { %675 = vmatprep.subr.bf16.mxu0 %v779_v7  ;;  %702 = vmatprep.subr.bf16.mxu1 %v779_v7 }
  0x60   : > { %676 = vmatpush3.bf16.msra.mxu0 %v779_v7  ;;  %710 = vmatpush3.bf16.msra.mxu1 %v779_v7 }
  0x61   : > { %677 = vmatprep.subr.bf16.mxu0 %v780_v8  ;;  %703 = vmatprep.subr.bf16.mxu1 %v780_v8 }
  0x64   : > { %678 = vmatpush3.bf16.msra.mxu0 %v780_v8  ;;  %711 = vmatpush3.bf16.msra.mxu1 %v780_v8 }
  0x65   : > { %679 = vmatprep.subr.bf16.mxu0 %v781_v9  ;;  %704 = vmatprep.subr.bf16.mxu1 %v781_v9 }
  0x68   : > { %680 = vmatpush3.bf16.msra.mxu0 %v781_v9  ;;  %712 = vmatpush3.bf16.msra.mxu1 %v781_v9 }
  0x6b   : > { %682 = vmatmul.mubr.bf16.vlgmr.msra.gmra.mxu0 %v784_v10  ;;  %690 = vmatmul.mubr.bf16.vlgmr.msra.gmra.mxu1 %v785_v11 }
  0x6c   : > { %685 = vmatprep.mubr.bf16.mxu0 %v786_v12  ;;  %693 = vmatprep.mubr.bf16.mxu1 %v787_v13 }
  0x73   : > { %686 = vmatmul.mubr.bf16.gmra.mxu0 %v788_v14  ;;  %694 = vmatmul.mubr.bf16.gmra.mxu1 %v789_v15 }
 0x12b   : > { %v683_v17 = vpop.f32.mrf.mxu0  ;;  %v691_v18 = vpop.f32.mrf.mxu1 }
 0x12c   : > { %v414_v19 = vadd.f32 %v683_v17, %v625_v16  ;;  %v446_v20 = vadd.f32 %v691_v18, %v625_v16 }
 0x12d   : > { %v405_v21 = vpop.f32.mrf.mxu0  ;;  %v437_v22 = vpop.f32.mrf.mxu1 }
 0x12e   : > { %790 = vtanh.f32 %v414_v19  ;;  %v406_v23 = vadd.f32 %v625_v16, %v405_v21  ;;  %v438_v24 = vadd.f32 %v625_v16, %v437_v22 }
 0x12f   : > { %792 = vtanh.f32 %v446_v20  ;;  %v684_v25 = vpop.f32.mrf.mxu0  ;;  %v692_v26 = vpop.f32.mrf.mxu1 }
 0x130   : > { %794 = vtanh.f32 %v406_v23  ;;  %v417_v27 = vadd.f32 %v684_v25, %v625_v16  ;;  %v449_v28 = vadd.f32 %v692_v26, %v625_v16 }
 0x131   : > { %796 = vtanh.f32 %v438_v24  ;;  %v408_v29 = vpop.f32.mrf.mxu0  ;;  %v440_v30 = vpop.f32.mrf.mxu1 }
 0x132   : > { %798 = vtanh.f32 %v417_v27  ;;  %v409_v31 = vadd.f32 %v625_v16, %v408_v29  ;;  %v441_v32 = vadd.f32 %v625_v16, %v440_v30 }
 0x133   : > { %800 = vtanh.f32 %v449_v28  ;;  %v687_v33 = vpop.f32.mrf.mxu0  ;;  %v695_v34 = vpop.f32.mrf.mxu1 }
 0x134   : > { %802 = vtanh.f32 %v409_v31  ;;  %v430_v35 = vadd.f32 %v687_v33, %v625_v16  ;;  %v462_v36 = vadd.f32 %v695_v34, %v625_v16 }
 0x135   : > { %804 = vtanh.f32 %v441_v32  ;;  %v421_v37 = vpop.f32.mrf.mxu0  ;;  %v453_v38 = vpop.f32.mrf.mxu1 }
 0x136   : > { %806 = vtanh.f32 %v430_v35  ;;  %v422_v39 = vadd.f32 %v625_v16, %v421_v37  ;;  %v454_v40 = vadd.f32 %v625_v16, %v453_v38 }
 0x137   : > { %808 = vtanh.f32 %v462_v36  ;;  %v688_v41 = vpop.f32.mrf.mxu0  ;;  %v696_v42 = vpop.f32.mrf.mxu1 }
 0x138   : > { %810 = vtanh.f32 %v422_v39  ;;  %v433_v43 = vadd.f32 %v688_v41, %v625_v16  ;;  %v465_v44 = vadd.f32 %v696_v42, %v625_v16 }
 0x139   : > { %812 = vtanh.f32 %v454_v40  ;;  %v424_v46 = vpop.f32.mrf.mxu0  ;;  %v456_v47 = vpop.f32.mrf.mxu1 }
 0x13a   : > { %814 = vtanh.f32 %v433_v43  ;;  %v425_v48 = vadd.f32 %v625_v16, %v424_v46  ;;  %v457_v49 = vadd.f32 %v625_v16, %v456_v47 }
 0x13b   : > { %v791_v50 = vpop.eup %790  ;;  %816 = vtanh.f32 %v465_v44 }
 0x13c   : > { %v793_v51 = vpop.eup %792  ;;  %v487_v52 = vmul.f32 %v791_v50, %v484_v45  ;;  %818 = vtanh.f32 %v425_v48 }
 0x13d   : > { %v795_v53 = vpop.eup %794  ;;  %v495_v54 = vmul.f32 %v793_v51, %v484_v45  ;;  %820 = vtanh.f32 %v457_v49 }
 0x13e   : > { %v797_v55 = vpop.eup %796  ;;  %503 = vst [vmem:[%s1129_s21 + $0x10] sm:$0xff] %v487_v52  ;;  %v485_v56 = vmul.f32 %v795_v53, %v484_v45 }
 0x13f   : > { %v799_v57 = vpop.eup %798  ;;  %511 = vst [vmem:[%s1129_s21 + $0x50] sm:$0xff] %v495_v54  ;;  %v493_v58 = vmul.f32 %v797_v55, %v484_v45 }
 0x140   : > { %v801_v59 = vpop.eup %800  ;;  %501 = vst [vmem:[%s1129_s21] sm:$0xff] %v485_v56  ;;  %v488_v60 = vmul.f32 %v799_v57, %v484_v45 }
 0x141   : > { %v803_v61 = vpop.eup %802  ;;  %509 = vst [vmem:[%s1129_s21 + $0x40] sm:$0xff] %v493_v58  ;;  %v496_v62 = vmul.f32 %v801_v59, %v484_v45 }
 0x142   : > { %v805_v63 = vpop.eup %804  ;;  %504 = vst [vmem:[%s1129_s21 + $0x18] sm:$0xff] %v488_v60  ;;  %v486_v0 = vmul.f32 %v803_v61, %v484_v45 }
 0x143   : > { %v807_v1 = vpop.eup %806  ;;  %512 = vst [vmem:[%s1129_s21 + $0x58] sm:$0xff] %v496_v62  ;;  %v494_v2 = vmul.f32 %v805_v63, %v484_v45 }
 0x144   : > { %v809_v3 = vpop.eup %808  ;;  %502 = vst [vmem:[%s1129_s21 + $0x8] sm:$0xff] %v486_v0  ;;  %v491_v4 = vmul.f32 %v807_v1, %v484_v45 }
 0x145   : > { %v811_v5 = vpop.eup %810  ;;  %510 = vst [vmem:[%s1129_s21 + $0x48] sm:$0xff] %v494_v2  ;;  %v499_v6 = vmul.f32 %v809_v3, %v484_v45 }
 0x146   : > { %v813_v7 = vpop.eup %812  ;;  %507 = vst [vmem:[%s1129_s21 + $0x30] sm:$0xff] %v491_v4  ;;  %v489_v8 = vmul.f32 %v811_v5, %v484_v45 }
 0x147   : > { %v815_v9 = vpop.eup %814  ;;  %515 = vst [vmem:[%s1129_s21 + $0x70] sm:$0xff] %v499_v6  ;;  %v497_v10 = vmul.f32 %v813_v7, %v484_v45 }
 0x148   : > { %v817_v11 = vpop.eup %816  ;;  %505 = vst [vmem:[%s1129_s21 + $0x20] sm:$0xff] %v489_v8  ;;  %v492_v12 = vmul.f32 %v815_v9, %v484_v45 }
 0x149   : > { %v819_v13 = vpop.eup %818  ;;  %513 = vst [vmem:[%s1129_s21 + $0x60] sm:$0xff] %v497_v10  ;;  %v500_v14 = vmul.f32 %v817_v11, %v484_v45 }
 0x14a   : > { %v821_v15 = vpop.eup %820  ;;  %508 = vst [vmem:[%s1129_s21 + $0x38] sm:$0xff] %v492_v12  ;;  %v490_v16 = vmul.f32 %v819_v13, %v484_v45 }
 0x14b   : > { %516 = vst [vmem:[%s1129_s21 + $0x78] sm:$0xff] %v500_v14  ;;  %v498_v17 = vmul.f32 %v821_v15, %v484_v45 }
 0x14c   : > { %506 = vst [vmem:[%s1129_s21 + $0x28] sm:$0xff] %v490_v16 }
 0x14d   : > { %514 = vst [vmem:[%s1129_s21 + $0x68] sm:$0xff] %v498_v17 }
 0x14e   : > { %889 = shalt.err (!%p886_p0)
}
 0x14f   : > { %s890_s5 = scalar_lea.hbm %s1149_s14, 2048  ;;  %s894_s22 = scalar_lea.hbm %s1201_s4, 4096 }
 0x150   : > { %p891_p5 = scmp.ne.s32.totalorder %s1149_s14, %s890_s5  ;;  %p895_p4 = scmp.lt.s32.totalorder %s1149_s14, %s1201_s4 }
 0x151   : > { %p896_p6 = scmp.lt.s32.totalorder %s894_s22, %s890_s5 }
 0x152   : > { %p892_p2 = pnand %p891_p5, %p1217_p11 }
 0x153   : > { %p897_p8 = por %p896_p6, %p895_p4 }
 0x154   : > { %p893_p1 = pneg %p892_p2 }
 0x156   : > { %p898_p3 = pnand %p897_p8, %p893_p1 }
 0x158   : > { %901 = shalt.err (!%p898_p3)
}
 0x159   : > { %s951_s7 = smov 128   ;;  %s952_s21 = smov 8  }
 0x15a   : > { %719 = dma.vmem_to_hbm [thread:$0]  (%p1217_p11), %s1151_s27, 2048, %s1149_s14, %s518_s3, %s951_s7, %s951_s7, %s952_s21  }
 0x15b PF: > { %s546_s26 = sand.u32 1, %s932_s17   ;;  %p1218_p7 = scmp.ne.s32.totalorder %s1207_s23, 0 }
 0x15c   : > { %p1219_p9 = scmp.ge.s32.totalorder %s944_s20, 2  ;;  %s547_s29 = scalar_lea.sflag [#allocation5], %s546_s26 }
 0x15e   : > { %p730_p10 = pnand %p1219_p9, %p1218_p7 }
 0x160   : > { %p731_p12 = pneg %p730_p10 }
 0x162   : > { %927 = dma.done.wait (%p731_p12), %s547_s29, 2048  }
 0x163   : > { %929 = vsyncadd (%p731_p12), %s547_s29, 4294965248  ;;  %p19_p13 = scmp.ge.s32.totalorder %s1035_s28, 4   ;;  %s1220_s17 = smov %s936_s18 }
 0x164   : > { %s1221_s18 = smov %s940_s19  ;;  %s1222_s19 = smov %s1055_s10 }
 0x165   : > { %s1223_s20 = smov %s1035_s28  ;;  %21 = sbr.rel (!%p19_p13) target bundleno = 8 (0x8), region = 85 }
 0x16a   :  { %552 = vsyncpa [#allocation4], 1 }
 0x16b   :  { %554 = vsyncpa [#allocation4 + $0x1], 1 }
 0x16c   :  { %555 = vsyncpa [#allocation7], 1 }
 0x16d   :  { %556 = vsyncpa [#allocation5], 1 }
 0x16e   :  { %558 = vsyncpa [#allocation5 + $0x1], 1 }

</bundles_post_ra>
